<compile_context>
chip_gen: v7x
topology: tpu7x:2x2x1
jax: 0.10.0
libtpu: 0.0.40
codegen_flags: <defaults>
</compile_context>

<pallas_src>
import jax
import jax.numpy as jnp
from jax.experimental import pallas as pl
from jax.experimental.pallas import tpu as pltpu


def expert_chain_kernel(x_hbm, w1_ref, b1_ref, w2_ref, b2_ref, o_hbm,
                        xbuf, acc, in_sem, out_sem):
    n = pl.program_id(0)
    e = pl.program_id(1)
    h = pl.program_id(2)
    n_e = pl.num_programs(1)
    n_h = pl.num_programs(2)
    bn = xbuf.shape[0]

    # Stage this token tile's input activation (bf16) into VMEM once per N tile.
    @pl.when((e == 0) & (h == 0))
    def _():
        cp = pltpu.make_async_copy(x_hbm.at[pl.ds(n * bn, bn), :], xbuf, in_sem)
        cp.start()
        cp.wait()

    # fc1 partial for this hidden tile: (bn, D) @ (D, tH) -> (bn, tH), f32 accumulate.
    hpart = jnp.dot(xbuf[...], w1_ref[0], preferred_element_type=jnp.float32)
    hpart = jnp.maximum(hpart + b1_ref[0], 0.0)           # bias + ReLU in f32

    # fc2 partial: (bn, tH) @ (tH, D), accumulated over H tiles in f32.
    contrib = jnp.dot(hpart.astype(jnp.bfloat16), w2_ref[0],
                      preferred_element_type=jnp.float32)

    @pl.when(h == 0)
    def _():
        acc[...] = contrib                                 # overwrite: no zero-init pass

    @pl.when(h != 0)
    def _():
        acc[...] += contrib

    # End of a non-final expert: commit the next chained activation in bf16.
    @pl.when((h == n_h - 1) & (e != n_e - 1))
    def _():
        xbuf[...] = (acc[...] + b2_ref[0]).astype(xbuf.dtype)

    # End of the final expert: add fc2 bias and DMA the f32 result straight to HBM.
    @pl.when((h == n_h - 1) & (e == n_e - 1))
    def _():
        acc[...] = acc[...] + b2_ref[0]
        cp = pltpu.make_async_copy(acc, o_hbm.at[pl.ds(n * bn, bn), :], out_sem)
        cp.start()
        cp.wait()


def prepare_expert_params(w1, b1, w2, b2):
    """One-time parameter prep (do at model setup, NOT per forward call):
    bf16 weights (halves HBM streaming; native MXU input dtype) and
    lane-dense f32 biases reshaped to (E, 1, H) / (E, 1, D)."""
    E, D, H = w1.shape
    return (w1.astype(jnp.bfloat16),
            b1.astype(jnp.float32).reshape(E, 1, H),
            w2.astype(jnp.bfloat16),
            b2.astype(jnp.float32).reshape(E, 1, D))


def dummy_expert_forward(x, w1, b1, w2, b2, *, block_n=None, block_h=None,
                         vmem_limit_bytes=None):
    """x: (N, D); w1: (E, D, H) bf16; b1: (E, 1, H) f32; w2: (E, H, D) bf16;
    b2: (E, 1, D) f32 (use prepare_expert_params once). Returns (N, D) f32."""
    N, D = x.shape
    E, _, H = w1.shape
    assert w1.dtype == jnp.bfloat16 and w2.dtype == jnp.bfloat16, \
        "pass weights through prepare_expert_params (one-time bf16 cast)"
    assert b1.shape == (E, 1, H) and b2.shape == (E, 1, D)

    # ---- per-generation tiling defaults -------------------------------------
    phys_vmem = 64 * 1024 * 1024                        # conservative: v7x per-TC
    try:
        phys_vmem = int(getattr(pltpu.get_tpu_info(), "vmem_capacity_bytes",
                                phys_vmem))
    except Exception:
        pass
    if vmem_limit_bytes is None:
        # Leave headroom below physical VMEM (Mosaic internal scratch, dbl buffers).
        vmem_limit_bytes = min(int(phys_vmem * 3 // 4), 100 * 1024 * 1024)
    if block_h is None:
        # 64 MiB VMEM/TC (v7x) -> 1024; 128 MiB (v5e/v6e) -> 3072.
        block_h = 1024 if phys_vmem <= 64 * 1024 * 1024 else 3072
    block_h = min(block_h, H)
    assert H % block_h == 0, "block_h must divide H"
    assert block_h % 128 == 0 or block_h == H, "block_h must be lane-aligned"
    n_h = H // block_h

    if block_n is None:
        block_n = N
        if N > 512:                                     # bound hpart/xbuf/acc VMEM
            for cand in (512, 384, 256, 128, 64, 32, 16, 8):
                if N % cand == 0:
                    block_n = cand
                    break
    assert N % block_n == 0, "block_n must divide N"
    n_n = N // block_n

    # Tiny (N, D) cast; the first matmul consumes bf16 anyway.
    x_bf16 = x.astype(jnp.bfloat16)

    flops = 4 * E * N * D * H                           # 2 matmuls * 2*N*D*H each
    bytes_accessed = (n_n * (w1.size + w2.size) * 2     # bf16 weights (per N tile)
                      + n_n * (b1.size + b2.size) * 4   # f32 biases
                      + x_bf16.size * 2 + N * D * 4)    # x in (bf16), out (f32)

    return pl.pallas_call(
        expert_chain_kernel,
        out_shape=jax.ShapeDtypeStruct((N, D), jnp.float32),
        grid_spec=pltpu.PrefetchScalarGridSpec(
            num_scalar_prefetch=0,
            grid=(n_n, E, n_h),
            in_specs=[
                pl.BlockSpec(memory_space=pl.ANY),                          # x in HBM
                pl.BlockSpec((1, D, block_h), lambda n, e, h: (e, 0, h)),   # W1 tile
                pl.BlockSpec((1, 1, block_h), lambda n, e, h: (e, 0, h)),   # b1 tile
                pl.BlockSpec((1, block_h, D), lambda n, e, h: (e, h, 0)),   # W2 tile
                pl.BlockSpec((1, 1, D), lambda n, e, h: (e, 0, 0)),         # b2
            ],
            out_specs=pl.BlockSpec(memory_space=pl.ANY),                    # DMA'd out
            scratch_shapes=[
                pltpu.VMEM((block_n, D), jnp.bfloat16),   # resident chained activation
                pltpu.VMEM((block_n, D), jnp.float32),    # fc2 accumulator over H tiles
                pltpu.SemaphoreType.DMA(()),              # input staging
                pltpu.SemaphoreType.DMA(()),              # output writeback
            ],
        ),
        compiler_params=pltpu.CompilerParams(
            dimension_semantics=("parallel", "arbitrary", "arbitrary"),
            vmem_limit_bytes=vmem_limit_bytes,
        ),
        cost_estimate=pl.CostEstimate(flops=flops, transcendentals=0,
                                      bytes_accessed=bytes_accessed),
    )(x_bf16, w1, b1, w2, b2)


def init_expert_params(key, num_experts, model_dim, hidden_size, dtype=jnp.float32):
    """Kaiming-uniform-style init matching torch.nn.Linear defaults
    (bound = 1/sqrt(fan_in)). Weights stored pre-transposed: fc1 -> (D, H),
    fc2 -> (H, D) so x @ W == PyTorch's F.linear(x, W_pt)."""
    keys = jax.random.split(key, 4)
    bound1 = 1.0 / jnp.sqrt(model_dim)
    bound2 = 1.0 / jnp.sqrt(hidden_size)
    w1 = jax.random.uniform(keys[0], (num_experts, model_dim, hidden_size),
                            dtype, minval=-bound1, maxval=bound1)
    b1 = jax.random.uniform(keys[1], (num_experts, hidden_size),
                            dtype, minval=-bound1, maxval=bound1)
    w2 = jax.random.uniform(keys[2], (num_experts, hidden_size, model_dim),
                            dtype, minval=-bound2, maxval=bound2)
    b2 = jax.random.uniform(keys[3], (num_experts, model_dim),
                            dtype, minval=-bound2, maxval=bound2)
    return w1, b1, w2, b2


def reference_forward(x, w1, b1, w2, b2):
    """Pure-JAX reference mimicking the kernel's numerics
    (bf16 matmul inputs / chained activations, f32 accumulation, f32 biases)."""
    E = w1.shape[0]
    w1b = w1.astype(jnp.bfloat16)
    w2b = w2.astype(jnp.bfloat16)
    y = x.astype(jnp.float32)
    for e in range(E):
        h = jnp.dot(y.astype(jnp.bfloat16), w1b[e],
                    preferred_element_type=jnp.float32)
        h = jnp.maximum(h + b1[e].astype(jnp.float32), 0.0)
        y = jnp.dot(h.astype(jnp.bfloat16), w2b[e],
                    preferred_element_type=jnp.float32) + b2[e].astype(jnp.float32)
    return y.astype(jnp.float32)


if __name__ == "__main__":
    # Small shapes consistent with the module (module: model_dim=1536,
    # hidden_size=6144, num_experts=10; scaled down here).
    N = 32
    MODEL_DIM = 128
    HIDDEN = 256
    NUM_EXPERTS = 4

    key = jax.random.PRNGKey(0)
    kx, kp = jax.random.split(key)
    x = jax.random.normal(kx, (N, MODEL_DIM), dtype=jnp.float32)
    w1, b1, w2, b2 = init_expert_params(kp, NUM_EXPERTS, MODEL_DIM, HIDDEN)

    # One-time parameter prep (hoisted out of the per-call path).
    pw1, pb1, pw2, pb2 = prepare_expert_params(w1, b1, w2, b2)

    ref = reference_forward(x, w1, b1, w2, b2)

    # Exercise H tiling (2 hidden tiles/expert) and the tiled token axis (2 N tiles).
    out = dummy_expert_forward(x, pw1, pb1, pw2, pb2, block_n=16, block_h=128)
    out = jax.block_until_ready(out)
    assert out.shape == (N, MODEL_DIM)
    assert jnp.allclose(out, ref, atol=2e-3, rtol=2e-3), "mismatch (tiled path)"

    # Default (auto) tiling path: single N tile / single H tile at these shapes.
    out2 = jax.block_until_ready(dummy_expert_forward(x, pw1, pb1, pw2, pb2))
    assert jnp.allclose(out2, ref, atol=2e-3, rtol=2e-3), "mismatch (default path)"

    print("KERNEL_OK")
</pallas_src>

<mosaic_0001>
module attributes {stable_mosaic.version = 11 : i64} {
  func.func @expert_chain_kernel(%arg0: i32, %arg1: i32, %arg2: i32, %arg3: memref<32x128xbf16, #tpu.memory_space<any>>, %arg4: memref<1x128x128xbf16, #tpu.memory_space<vmem>>, %arg5: memref<1x1x128xf32, #tpu.memory_space<vmem>>, %arg6: memref<1x128x128xbf16, #tpu.memory_space<vmem>>, %arg7: memref<1x1x128xf32, #tpu.memory_space<vmem>>, %arg8: memref<32x128xf32, #tpu.memory_space<any>>, %arg9: memref<16x128xbf16, #tpu.memory_space<vmem>>, %arg10: memref<16x128xf32, #tpu.memory_space<vmem>>, %arg11: memref<!tpu.dma_semaphore, #tpu.memory_space<semaphore_mem>>, %arg12: memref<!tpu.dma_semaphore, #tpu.memory_space<semaphore_mem>>) attributes {dimension_semantics = [#tpu.dimension_semantics<parallel>, #tpu.dimension_semantics<arbitrary>, #tpu.dimension_semantics<arbitrary>], iteration_bounds = array<i64: 2, 4, 2>, scalar_prefetch = 0 : i64, scratch_operands = 4 : i64, tpu.core_type = #tpu.core_type<tc>, window_params = [{}, {transform_indices = @transform_1, window_bounds = array<i64: 1, 128, 128>}, {transform_indices = @transform_2, window_bounds = array<i64: 1, 1, 128>}, {transform_indices = @transform_3, window_bounds = array<i64: 1, 128, 128>}, {transform_indices = @transform_4, window_bounds = array<i64: 1, 1, 128>}, {}]} {
    %c0_i32 = arith.constant 0 : i32
    %0 = arith.cmpi eq, %arg1, %c0_i32 : i32
    %c0_i32_0 = arith.constant 0 : i32
    %1 = arith.cmpi eq, %arg2, %c0_i32_0 : i32
    %2 = arith.andi %0, %1 : i1
    %3 = arith.extui %2 : i1 to i32
    %c0_i32_1 = arith.constant 0 : i32
    %4 = arith.cmpi ne, %3, %c0_i32_1 : i32
    scf.if %4 {
      %c16_i32 = arith.constant 16 : i32
      %35 = arith.muli %arg0, %c16_i32 : i32
      %c0_i32_22 = arith.constant 0 : i32
      %36 = tpu.memref_slice %arg3[%35, %c0_i32_22] : memref<32x128xbf16, #tpu.memory_space<any>> -> memref<16x128xbf16, #tpu.memory_space<any>>
      tpu.enqueue_dma source(%36 : memref<16x128xbf16, #tpu.memory_space<any>>) target(%arg9 : memref<16x128xbf16, #tpu.memory_space<vmem>>) target_semaphore(%arg11 : memref<!tpu.dma_semaphore, #tpu.memory_space<semaphore_mem>>)
      %c0_i32_23 = arith.constant 0 : i32
      %37 = tpu.memref_slice %arg3[%35, %c0_i32_23] : memref<32x128xbf16, #tpu.memory_space<any>> -> memref<16x128xbf16, #tpu.memory_space<any>>
      tpu.wait_dma2 semaphore(%arg11 : memref<!tpu.dma_semaphore, #tpu.memory_space<semaphore_mem>>) src(%37 : memref<16x128xbf16, #tpu.memory_space<any>>) dst(%arg9 : memref<16x128xbf16, #tpu.memory_space<vmem>>)
    } else {
    }
    %c0 = arith.constant 0 : index
    %c0_2 = arith.constant 0 : index
    %5 = vector.load %arg9[%c0, %c0_2] : memref<16x128xbf16, #tpu.memory_space<vmem>>, vector<16x128xbf16>
    %c0_3 = arith.constant 0 : index
    %c0_4 = arith.constant 0 : index
    %c0_5 = arith.constant 0 : index
    %6 = vector.load %arg4[%c0_3, %c0_4, %c0_5] : memref<1x128x128xbf16, #tpu.memory_space<vmem>>, vector<1x128x128xbf16>
    %7 = vector.shape_cast %6 : vector<1x128x128xbf16> to vector<128x128xbf16>
    %cst = arith.constant dense<0.000000e+00> : vector<16x128xf32>
    %8 = tpu.matmul %5, %7, %cst {dimension_numbers = #tpu.dot_dimension_numbers<[1], [0], [0], [1], [0, 0, 1, 1], [], []>} : vector<16x128xbf16>, vector<128x128xbf16>, vector<16x128xf32> -> vector<16x128xf32>
    %c0_6 = arith.constant 0 : index
    %c0_7 = arith.constant 0 : index
    %c0_8 = arith.constant 0 : index
    %9 = vector.load %arg5[%c0_6, %c0_7, %c0_8] : memref<1x1x128xf32, #tpu.memory_space<vmem>>, vector<1x1x128xf32>
    %10 = vector.shape_cast %9 : vector<1x1x128xf32> to vector<1x128xf32>
    %11 = vector.broadcast %10 : vector<1x128xf32> to vector<16x128xf32>
    %12 = arith.addf %8, %11 : vector<16x128xf32>
    %cst_9 = arith.constant 0.000000e+00 : f32
    %13 = vector.broadcast %cst_9 : f32 to vector<16x128xf32>
    %14 = arith.maximumf %12, %13 : vector<16x128xf32>
    %15 = arith.truncf %14 : vector<16x128xf32> to vector<16x128xbf16>
    %c0_10 = arith.constant 0 : index
    %c0_11 = arith.constant 0 : index
    %c0_12 = arith.constant 0 : index
    %16 = vector.load %arg6[%c0_10, %c0_11, %c0_12] : memref<1x128x128xbf16, #tpu.memory_space<vmem>>, vector<1x128x128xbf16>
    %17 = vector.shape_cast %16 : vector<1x128x128xbf16> to vector<128x128xbf16>
    %cst_13 = arith.constant dense<0.000000e+00> : vector<16x128xf32>
    %18 = tpu.matmul %15, %17, %cst_13 {dimension_numbers = #tpu.dot_dimension_numbers<[1], [0], [0], [1], [0, 0, 1, 1], [], []>} : vector<16x128xbf16>, vector<128x128xbf16>, vector<16x128xf32> -> vector<16x128xf32>
    %c0_i32_14 = arith.constant 0 : i32
    %19 = arith.cmpi eq, %arg2, %c0_i32_14 : i32
    %20 = arith.extui %19 : i1 to i32
    %c0_i32_15 = arith.constant 0 : i32
    %21 = arith.cmpi ne, %20, %c0_i32_15 : i32
    scf.if %21 {
      %c0_22 = arith.constant 0 : index
      %c0_23 = arith.constant 0 : index
      %35 = vector.load %arg10[%c0_22, %c0_23] : memref<16x128xf32, #tpu.memory_space<vmem>>, vector<16x128xf32>
      tpu.vector_store %arg10[%c0_22, %c0_23], %18 {strides = array<i32>} : memref<16x128xf32, #tpu.memory_space<vmem>>, vector<16x128xf32>,
    } else {
    }
    %c0_i32_16 = arith.constant 0 : i32
    %22 = arith.cmpi ne, %arg2, %c0_i32_16 : i32
    %23 = arith.extui %22 : i1 to i32
    %c0_i32_17 = arith.constant 0 : i32
    %24 = arith.cmpi ne, %23, %c0_i32_17 : i32
    scf.if %24 {
      %c0_22 = arith.constant 0 : index
      %c0_23 = arith.constant 0 : index
      %35 = vector.load %arg10[%c0_22, %c0_23] : memref<16x128xf32, #tpu.memory_space<vmem>>, vector<16x128xf32>
      %36 = arith.addf %35, %18 : vector<16x128xf32>
      %c0_24 = arith.constant 0 : index
      %c0_25 = arith.constant 0 : index
      %37 = vector.load %arg10[%c0_24, %c0_25] : memref<16x128xf32, #tpu.memory_space<vmem>>, vector<16x128xf32>
      tpu.vector_store %arg10[%c0_24, %c0_25], %36 {strides = array<i32>} : memref<16x128xf32, #tpu.memory_space<vmem>>, vector<16x128xf32>,
    } else {
    }
    %c1_i32 = arith.constant 1 : i32
    %25 = arith.cmpi eq, %arg2, %c1_i32 : i32
    %c3_i32 = arith.constant 3 : i32
    %26 = arith.cmpi ne, %arg1, %c3_i32 : i32
    %27 = arith.andi %25, %26 : i1
    %28 = arith.extui %27 : i1 to i32
    %c0_i32_18 = arith.constant 0 : i32
    %29 = arith.cmpi ne, %28, %c0_i32_18 : i32
    scf.if %29 {
      %c0_22 = arith.constant 0 : index
      %c0_23 = arith.constant 0 : index
      %35 = vector.load %arg10[%c0_22, %c0_23] : memref<16x128xf32, #tpu.memory_space<vmem>>, vector<16x128xf32>
      %c0_24 = arith.constant 0 : index
      %c0_25 = arith.constant 0 : index
      %c0_26 = arith.constant 0 : index
      %36 = vector.load %arg7[%c0_24, %c0_25, %c0_26] : memref<1x1x128xf32, #tpu.memory_space<vmem>>, vector<1x1x128xf32>
      %37 = vector.shape_cast %36 : vector<1x1x128xf32> to vector<1x128xf32>
      %38 = vector.broadcast %37 : vector<1x128xf32> to vector<16x128xf32>
      %39 = arith.addf %35, %38 : vector<16x128xf32>
      %40 = arith.truncf %39 : vector<16x128xf32> to vector<16x128xbf16>
      %c0_27 = arith.constant 0 : index
      %c0_28 = arith.constant 0 : index
      %41 = vector.load %arg9[%c0_27, %c0_28] : memref<16x128xbf16, #tpu.memory_space<vmem>>, vector<16x128xbf16>
      tpu.vector_store %arg9[%c0_27, %c0_28], %40 {strides = array<i32>} : memref<16x128xbf16, #tpu.memory_space<vmem>>, vector<16x128xbf16>,
    } else {
    }
    %c1_i32_19 = arith.constant 1 : i32
    %30 = arith.cmpi eq, %arg2, %c1_i32_19 : i32
    %c3_i32_20 = arith.constant 3 : i32
    %31 = arith.cmpi eq, %arg1, %c3_i32_20 : i32
    %32 = arith.andi %30, %31 : i1
    %33 = arith.extui %32 : i1 to i32
    %c0_i32_21 = arith.constant 0 : i32
    %34 = arith.cmpi ne, %33, %c0_i32_21 : i32
    scf.if %34 {
      %c0_22 = arith.constant 0 : index
      %c0_23 = arith.constant 0 : index
      %35 = vector.load %arg10[%c0_22, %c0_23] : memref<16x128xf32, #tpu.memory_space<vmem>>, vector<16x128xf32>
      %c0_24 = arith.constant 0 : index
      %c0_25 = arith.constant 0 : index
      %c0_26 = arith.constant 0 : index
      %36 = vector.load %arg7[%c0_24, %c0_25, %c0_26] : memref<1x1x128xf32, #tpu.memory_space<vmem>>, vector<1x1x128xf32>
      %37 = vector.shape_cast %36 : vector<1x1x128xf32> to vector<1x128xf32>
      %38 = vector.broadcast %37 : vector<1x128xf32> to vector<16x128xf32>
      %39 = arith.addf %35, %38 : vector<16x128xf32>
      %c0_27 = arith.constant 0 : index
      %c0_28 = arith.constant 0 : index
      %40 = vector.load %arg10[%c0_27, %c0_28] : memref<16x128xf32, #tpu.memory_space<vmem>>, vector<16x128xf32>
      tpu.vector_store %arg10[%c0_27, %c0_28], %39 {strides = array<i32>} : memref<16x128xf32, #tpu.memory_space<vmem>>, vector<16x128xf32>,
      %c16_i32 = arith.constant 16 : i32
      %41 = arith.muli %arg0, %c16_i32 : i32
      %c0_i32_29 = arith.constant 0 : i32
      %42 = tpu.memref_slice %arg8[%41, %c0_i32_29] : memref<32x128xf32, #tpu.memory_space<any>> -> memref<16x128xf32, #tpu.memory_space<any>>
      tpu.enqueue_dma source(%arg10 : memref<16x128xf32, #tpu.memory_space<vmem>>) target(%42 : memref<16x128xf32, #tpu.memory_space<any>>) target_semaphore(%arg12 : memref<!tpu.dma_semaphore, #tpu.memory_space<semaphore_mem>>)
      %c0_i32_30 = arith.constant 0 : i32
      %43 = tpu.memref_slice %arg8[%41, %c0_i32_30] : memref<32x128xf32, #tpu.memory_space<any>> -> memref<16x128xf32, #tpu.memory_space<any>>
      tpu.wait_dma2 semaphore(%arg12 : memref<!tpu.dma_semaphore, #tpu.memory_space<semaphore_mem>>) src(%arg10 : memref<16x128xf32, #tpu.memory_space<vmem>>) dst(%43 : memref<16x128xf32, #tpu.memory_space<any>>)
    } else {
    }
    return
  }
  func.func @transform_1(%arg0: i32, %arg1: i32, %arg2: i32) -> (i32, i32, i32) {
    %c0_i32 = arith.constant 0 : i32
    %c0_i32_0 = arith.constant 0 : i32
    return %arg1, %c0_i32, %arg2 : i32, i32, i32
  }
  func.func @transform_2(%arg0: i32, %arg1: i32, %arg2: i32) -> (i32, i32, i32) {
    %c0_i32 = arith.constant 0 : i32
    %c0_i32_0 = arith.constant 0 : i32
    return %arg1, %c0_i32, %arg2 : i32, i32, i32
  }
  func.func @transform_3(%arg0: i32, %arg1: i32, %arg2: i32) -> (i32, i32, i32) {
    %c0_i32 = arith.constant 0 : i32
    %c0_i32_0 = arith.constant 0 : i32
    return %arg1, %arg2, %c0_i32 : i32, i32, i32
  }
  func.func @transform_4(%arg0: i32, %arg1: i32, %arg2: i32) -> (i32, i32, i32) {
    %c0_i32 = arith.constant 0 : i32
    %c0_i32_0 = arith.constant 0 : i32
    %c0_i32_1 = arith.constant 0 : i32
    return %arg1, %c0_i32, %c0_i32_0 : i32, i32, i32
  }
}

</mosaic_0001>

<bundles_post_ra>
// kernel: tpu_custom_call.1
= control target key start
LH: loop header
LB: loop body
LE: loop exit
PB: predicated region body
PF: predicated region fallthrough
CT: control target
= control target key end

     0   :  { %s1553_s0 = inlined_call_operand.hbm [shape: bf16[32,128], index: 0, kind: input, shape index: {}]   ;;  %s1554_s1 = inlined_call_operand.hbm [shape: bf16[4,128,256], index: 1, kind: input, shape index: {}]   ;;  %s1555_s2 = inlined_call_operand.hbm [shape: f32[4,1,256], index: 2, kind: input, shape index: {}]   ;;  %s1556_s3 = inlined_call_operand.hbm [shape: bf16[4,256,128], index: 3, kind: input, shape index: {}]   ;;  %s1557_s4 = inlined_call_operand.vmem [shape: f32[4,1,128], index: 4, kind: input, shape index: {}]   ;;  %s1558_s5 = inlined_call_operand.hbm [shape: f32[32,128], index: 5, kind: output, shape index: {}]  }
   0x1   :  { %1569 = sst [smem:[#allocation27_spill]] %s1554_s1 }
   0x2   :  { %1570 = sst [smem:[#allocation28_spill]] %s1555_s2 }
   0x3   :  { %1571 = sst [smem:[#allocation29_spill]] %s1558_s5 }
   0x4   :  { %10 = vsyncpa [#allocation7], 0 }
   0x5   :  { %12 = vsyncpa [#allocation7 + $0x1], 0 }
   0x6   :  { %13 = vsyncpa [#allocation9], 0 }
   0x7   :  { %15 = vsyncpa [#allocation9 + $0x1], 0  ;;  %s1200_s18 = smov 0   ;;  %s1202_s19 = smov 0  }
   0x8   :  { %s1204_s20 = smov 0   ;;  %s1206_s21 = smov 0  }
   0x9   :  { %s1208_s22 = smov 0   ;;  %s1210_s23 = smov 0  }
   0xa   :  { %s1212_s24 = smov 0   ;;  %s1214_s25 = smov 0  }
   0xb   :  { %s1216_s26 = smov 0   ;;  %s1218_s27 = smov 0  }
   0xc LB: > { %1572 = sst [smem:[#allocation21_spill]] %s1130_s20  ;;  %s1559_s28 = sadd.s32 4294967295, %s1158_s27   ;;  %s1158_s27 = sphi %s1218_s27, %s21_s27   ;;  %s1154_s26 = sphi %s1216_s26, %s1596_s26   ;;  %s1150_s25 = sphi %s1214_s25, %s1602_s25   ;;  %s1146_s24 = sphi %s1212_s24, %s1601_s24   ;;  %s1142_s23 = sphi %s1210_s23, %s1593_s23   ;;  %s1138_s22 = sphi %s1208_s22, %s1600_s22   ;;  %s1134_s21 = sphi %s1206_s21, %s1599_s21   ;;  %s1130_s20 = sphi %s1204_s20, %s1592_s20   ;;  %s1126_s19 = sphi %s1202_s19, %s1598_s19   ;;  %s1122_s18 = sphi %s1200_s18, %s1597_s18  }
   0xd   : > { %1573 = sst [smem:[#allocation22_spill]] %s1154_s26  ;;  %s29_s29 = sadd.s32 1, %s1146_s24 }
   0xe   : > { %p30_p0 = scmp.ge.s32.totalorder %s29_s29, 2  ;;  %s32_s30 = sadd.s32 1, %s1150_s25 }
   0xf   : > { %s36_s6 = sadd.s32 1, %s1154_s26  ;;  %s45_s7 = sadd.s32 1, %s1130_s20 }
  0x10   : > { %s1604_s29 = smov (%p30_p0, %s29_s29), 0  ;;  %s1606_s30 = smov (!%p30_p0, %s32_s30), %s1150_s25 }
  0x11   : > { %1574 = sst [smem:[#allocation23_spill]] %s1604_s29  ;;  %s41_s8 = ssub.s32 %s1146_s24, %s1604_s29 }
  0x12   : > { %p51_p1 = scmp.ne.s32.totalorder %s1130_s20, %s1126_s19  ;;  %p34_p2 = scmp.ge.s32.totalorder %s1606_s30, 4 }
  0x13   : > { %p52_p3 = scmp.eq.s32.totalorder %s1158_s27, 0  ;;  %p58_p4 = scmp.ne.s32.totalorder %s1126_s19, %s1122_s18 }
  0x14   : > { %p59_p5 = scmp.eq.s32.totalorder %s1559_s28, 0  ;;  %s1608_s30 = smov (%p34_p2, %s1606_s30), 0 }
  0x15   : > { %1575 = sst [smem:[#allocation24_spill]] %s1608_s30  ;;  %s1610_s6 = smov (!%p34_p2, %s36_s6), %s1154_s26 }
  0x16   : > { %s40_s9 = ssub.s32 %s1150_s25, %s1608_s30  ;;  %p53_p6 = por %p52_p3, %p51_p1 }
  0x17   : > { %p38_p7 = scmp.ge.s32.totalorder %s1610_s6, 2  ;;  %s42_s10 = sor.u32 %s41_s8, %s40_s9 }
  0x18   : > { %p43_p8 = scmp.eq.s32.totalorder %s42_s10, 0  ;;  %p1272_p9 = por %p59_p5, %p58_p4 }
  0x19   : > { %s1612_s6 = smov (%p38_p7, %s1610_s6), 0  ;;  %p818_p10 = scmp.lt.s32.totalorder %s1158_s27, 16 }
  0x1a   : > { %s1576_s11 = scalar_select %p1272_p9, 1, 0 }
  0x1b   : > { %1577 = sst [smem:[#allocation25_spill]] %s1612_s6  ;;  %s1283_s13 = sand.u32 1, %s1130_s20  }
  0x1c   : > { %s1279_s12 = scalar_select %p43_p8, %s1130_s20, %s45_s7  }
  0x1d   : > { %s1562_s14 = sshll.u32 %s1283_s13, 6  ;;  %s156_s15 = sand.u32 1, %s1158_s27  }
  0x1e   : > { %1578 = sst [smem:[#allocation26_spill]] %s1279_s12  ;;  %p1287_p11 = pnand %p818_p10, %p53_p6 }
  0x1f   : > { %s1293_s17 = scalar_lea.vmem [#allocation6], %s1562_s14  ;;  %s703_s7 = sshll.u32 %s1150_s25, 1 }
  0x20   : > { %s146_s18 = sshll.u32 %s1293_s17, 4  ;;  %s164_s8 = sadd.s32 %s1146_s24, %s703_s7  ;;  %s1338_s18 = int_to_ptr.vmem [resolvable:$true] %s146_s18 }
  0x21   : > { %s159_s9 = scalar_lea.vmem [#allocation8], %s1283_s13  ;;  %s704_s28 = sshll.u32 %s164_s8, 4 }
  0x22   : > { %s168_s10 = sshll.u32 %s159_s9, 4  ;;  %s1580_s2 = sld [smem:[#allocation28_spill]]  ;;  %s1299_s10 = int_to_ptr.vmem [resolvable:$true] %s168_s10 }
  0x23   : > { %s1306_s14 = scalar_lea.sflag [#allocation9], %s156_s15  ;;  %p1312_p13 = pneg %p1287_p11 }
  0x28   : > { %s1304_s29 = scalar_lea.hbm %s1580_s2, %s704_s28  ;;  %s927_s6 = scalar_lea.hbm %s1580_s2, 128 }
  0x29   : > { %s922_s26 = scalar_lea.hbm %s1304_s29, 16  ;;  %p928_p2 = scmp.lt.u32.totalorder %s1304_s29, %s1580_s2 }
  0x2a   : > { %p923_p12 = scmp.ne.s32.totalorder %s1304_s29, %s922_s26  ;;  %p929_p3 = scmp.lt.u32.totalorder %s927_s6, %s922_s26 }
  0x2b   : > { %p931_p5 = scmp.lt.u32.totalorder %s922_s26, %s1304_s29 }
  0x2c   : > { %p925_p0 = pnand %p1312_p13, %p923_p12  ;;  %p930_p4 = por %p929_p3, %p928_p2 }
  0x2e   : > { %p926_p1 = pneg %p925_p0  ;;  %p932_p6 = por %p931_p5, %p930_p4 }
  0x30   : > { %p933_p7 = pnand %p932_p6, %p926_p1 }
  0x32   : > { %936 = shalt.err (!%p933_p7)
}
  0x33   : > { %s937_s15 = scalar_lea.vmem %s1299_s10, 16  ;;  %s1160_s30 = smov [#allocation8]  }
  0x34   : > { %p938_p8 = scmp.ne.s32.totalorder %s1299_s10, %s937_s15  ;;  %s942_s28 = sshll.u32 %s1160_s30, 4  ;;  %s943_s28 = int_to_ptr.vmem [resolvable:$false] %s942_s28 }
  0x35   : > { %s944_s8 = scalar_lea.vmem %s943_s28, 32  ;;  %p945_p0 = scmp.lt.s32.totalorder %s1299_s10, %s943_s28 }
  0x36   : > { %p940_p10 = pnand %p938_p8, %p1312_p13  ;;  %p946_p9 = scmp.lt.s32.totalorder %s944_s8, %s937_s15 }
  0x38   : > { %p941_p12 = pneg %p940_p10  ;;  %p947_p2 = por %p946_p9, %p945_p0 }
  0x3a   : > { %p948_p3 = pnand %p947_p2, %p941_p12 }
  0x3c   : > { %951 = shalt.err (!%p948_p3)
}
  0x3d   : > { %814 = dma.hbm_to_vmem [thread:$0]  (!%p1287_p11), %s1304_s29, 16, %s1299_s10, %s1306_s14  }
  0x3e   : > { %s1582_s26 = sshll.u32 %s1283_s13, 6  ;;  %s1565_s15 = sshll.u32 %s1150_s25, 5 }
  0x3f   : > { %s1342_s6 = scalar_lea.vmem [#allocation10], %s1582_s26  ;;  %s143_s30 = sadd.s32 %s1146_s24, %s1565_s15 }
  0x40   : > { %s702_s28 = sshll.u32 %s143_s30, 6  ;;  %s1583_s1 = sld [smem:[#allocation27_spill]] }
  0x41   : > { %s706_s29 = sshll.u32 %s1146_s24, 4  ;;  %s135_s17 = scalar_lea.sflag [#allocation7], %s1283_s13 }
  0x46   : > { %s1352_s12 = scalar_lea.hbm %s1583_s1, %s702_s28  ;;  %s957_s30 = scalar_lea.hbm %s1583_s1, 8192 }
  0x47   : > { %s952_s10 = scalar_lea.hbm %s1352_s12, 1024  ;;  %p958_p5 = scmp.lt.u32.totalorder %s1352_s12, %s1583_s1 }
  0x48   : > { %p953_p9 = scmp.ne.s32.totalorder %s1352_s12, %s952_s10  ;;  %p959_p6 = scmp.lt.u32.totalorder %s957_s30, %s952_s10 }
  0x49   : > { %p961_p8 = scmp.lt.u32.totalorder %s952_s10, %s1352_s12 }
  0x4a   : > { %p955_p1 = pnand %p953_p9, %p1312_p13  ;;  %p960_p7 = por %p959_p6, %p958_p5 }
  0x4c   : > { %p956_p4 = pneg %p955_p1  ;;  %p962_p10 = por %p961_p8, %p960_p7 }
  0x4e   : > { %p963_p12 = pnand %p962_p10, %p956_p4 }
  0x50   : > { %966 = shalt.err (!%p963_p12)
}
  0x51   : > { %s967_s2 = scalar_lea.vmem %s1338_s18, 1024  ;;  %s1161_s9 = smov [#allocation6]  }
  0x52   : > { %p968_p0 = scmp.ne.s32.totalorder %s1338_s18, %s967_s2  ;;  %s972_s28 = sshll.u32 %s1161_s9, 4  ;;  %s973_s28 = int_to_ptr.vmem [resolvable:$false] %s972_s28 }
  0x53   : > { %s974_s20 = scalar_lea.vmem %s973_s28, 2048  ;;  %p975_p9 = scmp.lt.s32.totalorder %s1338_s18, %s973_s28 }
  0x54   : > { %p970_p2 = pnand %p968_p0, %p1312_p13  ;;  %p976_p1 = scmp.lt.s32.totalorder %s974_s20, %s967_s2 }
  0x56   : > { %p971_p3 = pneg %p970_p2  ;;  %p977_p5 = por %p976_p1, %p975_p9 }
  0x58   : > { %p978_p6 = pnand %p977_p5, %p971_p3 }
  0x5a   : > { %981 = shalt.err (!%p978_p6)
}
  0x5b   : > { %s1162_s15 = smov 128   ;;  %s1163_s8 = smov 64  }
  0x5c   : > { %s1164_s10 = smov 4   ;;  %s1584_s26 = sshll.u32 %s1342_s6, 4  ;;  %s1383_s26 = int_to_ptr.vmem [resolvable:$true] %s1584_s26 }
  0x5d   : > { %811 = dma.hbm_to_vmem [thread:$0]  (!%p1287_p11), %s1352_s12, 1024, %s1338_s18, %s135_s17, %s1162_s15, %s1163_s8, %s1164_s10  }
  0x5e   : > { %s1585_s30 = sshll.u32 %s1150_s25, 5  ;;  %s987_s18 = scalar_lea.hbm %s1556_s3, 8192 }
  0x5f   : > { %s185_s2 = sadd.s32 %s706_s29, %s1585_s30 }
  0x60   : > { %s708_s9 = sshll.u32 %s185_s2, 6 }
  0x61   : > { %s1392_s1 = scalar_lea.hbm %s1556_s3, %s708_s9 }
  0x62   : > { %s982_s5 = scalar_lea.hbm %s1392_s1, 1024  ;;  %p988_p10 = scmp.lt.u32.totalorder %s1392_s1, %s1556_s3 }
  0x63   : > { %p983_p4 = scmp.ne.s32.totalorder %s1392_s1, %s982_s5  ;;  %p989_p12 = scmp.lt.u32.totalorder %s987_s18, %s982_s5 }
  0x64   : > { %p991_p2 = scmp.lt.u32.totalorder %s982_s5, %s1392_s1 }
  0x65   : > { %p985_p7 = pnand %p983_p4, %p1312_p13  ;;  %p990_p0 = por %p989_p12, %p988_p10 }
  0x67   : > { %p986_p8 = pneg %p985_p7  ;;  %p992_p3 = por %p991_p2, %p990_p0 }
  0x69   : > { %p993_p9 = pnand %p992_p3, %p986_p8 }
  0x6b   : > { %996 = shalt.err (!%p993_p9)
}
  0x6c   : > { %s997_s17 = scalar_lea.vmem %s1383_s26, 1024  ;;  %s1165_s15 = smov [#allocation10]  }
  0x6d   : > { %p998_p1 = scmp.ne.s32.totalorder %s1383_s26, %s997_s17  ;;  %s1002_s30 = sshll.u32 %s1165_s15, 4  ;;  %s1003_s30 = int_to_ptr.vmem [resolvable:$false] %s1002_s30 }
  0x6e   : > { %s1004_s2 = scalar_lea.vmem %s1003_s30, 2048  ;;  %p1005_p4 = scmp.lt.s32.totalorder %s1383_s26, %s1003_s30 }
  0x6f   : > { %p1000_p5 = pnand %p998_p1, %p1312_p13  ;;  %p1006_p7 = scmp.lt.s32.totalorder %s1004_s2, %s997_s17 }
  0x71   : > { %p1001_p6 = pneg %p1000_p5  ;;  %p1007_p10 = por %p1006_p7, %p1005_p4 }
  0x73   : > { %p1008_p12 = pnand %p1007_p10, %p1001_p6 }
  0x75   : > { %1011 = shalt.err (!%p1008_p12)
}
  0x76   : > { %817 = dma.hbm_to_vmem [thread:$0]  (!%p1287_p11), %s1392_s1, 1024, %s1383_s26, %s1306_s14, %s1163_s8, %s1163_s8, %s1164_s10  }
  0x77   : > { %p710_p13 = scmp.lt.s32.totalorder %s1158_s27, 1 }
  0x78   : > { %s1421_s5 = sand.u32 (!%p710_p13), 1, %s1126_s19   ;;  %p1586_p8 = scmp.ne.s32.totalorder (!%p710_p13), %s1576_s11, 0 }
  0x79   : > { %204 = sbr.rel (%p710_p13) target bundleno = 683 (0x2ab), region = 36  ;;  %s711_s7 = sshll.u32 (!%p710_p13), %s1421_s5, 6 }
  0x7a   : > { %s207_s9 = scalar_lea.sflag (!%p710_p13), [#allocation7], %s1421_s5  ;;  %s1427_s16 = scalar_lea.vmem (!%p710_p13), [#allocation6], %s711_s7 }
  0x80   : > { %1107 = dma.done.wait (%p1586_p8), %s207_s9, 1024  }
  0x81   : > { %1109 = vsyncadd (%p1586_p8), %s207_s9, 4294966272  ;;  %s1587_s1 = sadd.s32 4294967295, %s1158_s27   ;;  %s218_s10 = scalar_lea.vmem [#allocation8], %s1421_s5 }
  0x82   : > { %s215_s14 = sand.u32 1, %s1587_s1  }
  0x83   : > { %s216_s8 = scalar_lea.sflag [#allocation9], %s215_s14 }
  0x84   : > { %1111 = dma.done.wait (%p1586_p8), %s216_s8, 1040  }
  0x85   : > { %1113 = vsyncadd (%p1586_p8), %s216_s8, 4294966256  ;;  %p258_p11 = scmp.lt.s32.totalorder %s1138_s22, 3  ;;  %p262_p0 = scmp.eq.s32.totalorder %s1138_s22, 0 }
  0x86   : > { %p1568_p2 = scmp.eq.s32.totalorder %s1134_s21, 0  ;;  %s713_s20 = sshll.u32 %s1142_s23, 4 }
  0x87   : > { %s259_s26 = scalar_select %p258_p11, %s1138_s22, 3 }
  0x88   : > { %p1446_p3 = pnand %p1568_p2, %p262_p0  ;;  %s269_s18 = sshra.s32 %s713_s20, 3 }
  0x89   : > { %s1454_s13 = scalar_lea.vmem %s1557_s4, %s259_s26  ;;  %s714_s6 = sshll.u32 %s269_s18, 6 }
  0x8a   : > { %s272_s15 = scalar_lea.hbm %s1553_s0, %s714_s6  ;;  %s1166_s30 = smov [#allocation2]  }
  0x8b   : > { %s280_s2 = sshll.u32 %s1166_s30, 4  ;;  %s1012_s9 = scalar_lea.hbm %s272_s15, 128  ;;  %s281_s2 = int_to_ptr.vmem [resolvable:$true] %s280_s2 }
  0x8c   : > { %p1013_p9 = scmp.ne.s32.totalorder %s272_s15, %s1012_s9  ;;  %p1014_p1 = pneg %p1446_p3 }
  0x8d   : > { %s1017_s8 = scalar_lea.hbm %s1553_s0, 256  ;;  %p1018_p4 = scmp.lt.u32.totalorder %s272_s15, %s1553_s0 }
  0x8e   : > { %p1015_p5 = pnand %p1014_p1, %p1013_p9  ;;  %p1019_p7 = scmp.lt.u32.totalorder %s1017_s8, %s1012_s9 }
  0x8f   : > { %p1021_p12 = scmp.lt.u32.totalorder %s1012_s9, %s272_s15 }
  0x90   : > { %p1016_p6 = pneg %p1015_p5  ;;  %p1020_p10 = por %p1019_p7, %p1018_p4 }
  0x92   : > { %p1022_p13 = por %p1021_p12, %p1020_p10 }
  0x94   : > { %p1023_p8 = pnand %p1022_p13, %p1016_p6 }
  0x96   : > { %1026 = shalt.err (!%p1023_p8)  }
  0x97   : > { %s1027_s11 = scalar_lea.vmem %s281_s2, 128  ;;  %p1035_p5 = scmp.lt.s32.totalorder %s281_s2, %s281_s2 }
  0x98   : > { %p1028_p11 = scmp.ne.s32.totalorder %s281_s2, %s1027_s11  ;;  %p1036_p2 = scmp.lt.s32.totalorder %s1027_s11, %s1027_s11 }
  0x9a   : > { %p1030_p0 = pnand %p1028_p11, %p1014_p1  ;;  %p1037_p4 = por %p1036_p2, %p1035_p5 }
  0x9c   : > { %p1031_p9 = pneg %p1030_p0 }
  0x9e   : > { %p1038_p7 = pnand %p1037_p4, %p1031_p9 }
  0xa0   : > { %1041 = shalt.err (!%p1038_p7)  }
  0xa1   : > { %806 = dma.hbm_to_vmem [thread:$0]  (!%p1446_p3), %s272_s15, 128, %s281_s2, [#allocation4] }
  0xa2   : > { %s1477_s12 = scalar_lea.vmem [#allocation10], %s711_s7 }
  0xa3   : > { %1115 = dma.done.wait (!%p1446_p3), [#allocation4], 128 }
  0xa4   : > { %1117 = vsyncadd (!%p1446_p3), [#allocation4], 4294967168  ;;  %v1167_v0 = vmov 0.0   ;;  %vm1168_vm0 = vmmov 0   ;;  %v906_v1 = vld [vmem:[%s1427_s16] sm:$0xff]   ;;  %v907_v2 = vld [vmem:[%s1427_s16 + $0x8] sm:$0xff]  }
  0xa5   : > { %759 = vmatprep.subr.bf16.mxu0 %v1167_v0  ;;  %775 = vmatprep.mubr.msk.bf16.mxu0 %vm1168_vm0, %v1167_v0  ;;  %v908_v3 = vld [vmem:[%s1427_s16 + $0x10] sm:$0xff]   ;;  %v914_v4 = vld [vmem:[%s1477_s12] sm:$0xff]   ;;  %v909_v5 = vld [vmem:[%s1427_s16 + $0x18] sm:$0xff]   ;;  %p732_p2 = scmp.ne.s32.totalorder %s1134_s21, 0 }
  0xa6   : > { %779 = vmatprep.subr.bf16.mxu1 %v1167_v0  ;;  %795 = vmatprep.mubr.msk.bf16.mxu1 %vm1168_vm0, %v1167_v0  ;;  %v915_v6 = vld [vmem:[%s1477_s12 + $0x8] sm:$0xff]   ;;  %v910_v7 = vld [vmem:[%s1427_s16 + $0x20] sm:$0xff]   ;;  %v916_v8 = vld [vmem:[%s1477_s12 + $0x10] sm:$0xff]  }
  0xa7   : > { %760 = vmatpush3.bf16.msra.mxu0 %v906_v1  ;;  %780 = vmatpush3.bf16.msra.mxu1 %v914_v4  ;;  %v911_v9 = vld [vmem:[%s1427_s16 + $0x28] sm:$0xff]   ;;  %v917_v10 = vld [vmem:[%s1477_s12 + $0x18] sm:$0xff]   ;;  %v912_v11 = vld [vmem:[%s1427_s16 + $0x30] sm:$0xff]  }
  0xa8   : > { %761 = vmatprep.subr.bf16.mxu0 %v1167_v0  ;;  %781 = vmatprep.subr.bf16.mxu1 %v1167_v0  ;;  %v918_v12 = vld [vmem:[%s1477_s12 + $0x20] sm:$0xff]   ;;  %v913_v13 = vld [vmem:[%s1427_s16 + $0x38] sm:$0xff]   ;;  %v919_v14 = vld [vmem:[%s1477_s12 + $0x28] sm:$0xff]  }
  0xa9   : > { %v288_v15 = vld [vmem:[#allocation2] sm:$0xff]  ;;  %v920_v16 = vld [vmem:[%s1477_s12 + $0x30] sm:$0xff]   ;;  %v921_v17 = vld [vmem:[%s1477_s12 + $0x38] sm:$0xff]  }
  0xaa   : > { %v715_v18 = vld [vmem:[%s218_s10] ss:$0 sm:$0xff] }
  0xab   : > { %762 = vmatpush3.bf16.msra.mxu0 %v907_v2  ;;  %782 = vmatpush3.bf16.msra.mxu1 %v915_v6 }
  0xac   : > { %763 = vmatprep.subr.bf16.mxu0 %v1167_v0  ;;  %783 = vmatprep.subr.bf16.mxu1 %v1167_v0 }
  0xaf   : > { %764 = vmatpush3.bf16.msra.mxu0 %v908_v3  ;;  %784 = vmatpush3.bf16.msra.mxu1 %v916_v8 }
  0xb0   : > { %765 = vmatprep.subr.bf16.mxu0 %v1167_v0  ;;  %785 = vmatprep.subr.bf16.mxu1 %v1167_v0 }
  0xb3   : > { %766 = vmatpush3.bf16.msra.mxu0 %v909_v5  ;;  %786 = vmatpush3.bf16.msra.mxu1 %v917_v10 }
  0xb4   : > { %767 = vmatprep.subr.bf16.mxu0 %v1167_v0  ;;  %787 = vmatprep.subr.bf16.mxu1 %v1167_v0 }
  0xb7   : > { %768 = vmatpush3.bf16.msra.mxu0 %v910_v7  ;;  %788 = vmatpush3.bf16.msra.mxu1 %v918_v12 }
  0xb8   : > { %769 = vmatprep.subr.bf16.mxu0 %v1167_v0  ;;  %789 = vmatprep.subr.bf16.mxu1 %v1167_v0 }
  0xbb   : > { %770 = vmatpush3.bf16.msra.mxu0 %v911_v9  ;;  %790 = vmatpush3.bf16.msra.mxu1 %v919_v14 }
  0xbc   : > { %771 = vmatprep.subr.bf16.mxu0 %v1167_v0  ;;  %791 = vmatprep.subr.bf16.mxu1 %v1167_v0 }
  0xbf   : > { %772 = vmatpush3.bf16.msra.mxu0 %v912_v11  ;;  %792 = vmatpush3.bf16.msra.mxu1 %v920_v16 }
  0xc0   : > { %773 = vmatprep.subr.bf16.mxu0 %v1167_v0  ;;  %793 = vmatprep.subr.bf16.mxu1 %v1167_v0 }
  0xc3   : > { %774 = vmatpush3.bf16.msra.mxu0 %v913_v13  ;;  %794 = vmatpush3.bf16.msra.mxu1 %v921_v17 }
  0xc6   : > { %776 = vmatmul.mubr.bf16.vlgmr.msra.gmra.mrb[0].mxu0 %v288_v15 }
 0x199   : > { %v394_v19 = vpop.f32.mrb[0].mxu0 }
 0x19a   : > { %v395_v20 = vadd.f32 %v715_v18, %v394_v19  ;;  %v777_v21 = vpop.f32.mrb[1].mxu0 }
 0x19b   : > { %v397_v22 = vpop.f32.mrb[2].mxu0 }
 0x19c   : > { %v398_v23 = vadd.f32 %v715_v18, %v397_v22  ;;  %v778_v24 = vpop.f32.mrb[3].mxu0  ;;  %v401_v25 = vmax.f32 %v395_v20, 0.0 }
 0x19e   : > { %v402_v26 = vmax.f32 %v398_v23, 0.0 }
 0x1a0   : > { %v403_v27 = vpack.c.bf16 %v402_v26, %v401_v25 }
 0x1a2   : > { %796 = vmatmul.mubr.bf16.vlgmr.msra.gmra.mrb[0].mxu1 %v403_v27 }
 0x272   : > { %511 = sbr.rel (%p732_p2) target bundleno = 633 (0x279), region = 60 }
 0x275   : > { %v502_v28 = vpop.f32.mrb[0].mxu1 }
 0x276   : > { %v797_v29 = vpop.f32.mrb[1].mxu1  ;;  %512 = vst [vmem:[#allocation3] sm:$0xff] (!%p732_p2), %v502_v28 }
 0x277   : > { %v505_v30 = vpop.f32.mrb[2].mxu1 }
 0x278   : > { %v798_v31 = vpop.f32.mrb[3].mxu1  ;;  %513 = vst [vmem:[#allocation3 + $0x8] sm:$0xff] (!%p732_p2), %v505_v30 }
 0x279 PF: > { %p1589_p3 = scmp.eq.s32.totalorder %s1134_s21, 0 }
 0x27b   : > { %517 = sbr.rel (%p1589_p3) target bundleno = 643 (0x283), region = 64 }
 0x27d   : > { %v518_v32 = vld [vmem:[#allocation3] sm:$0xff] (!%p1589_p3) }
 0x27e   : > { %v520_v34 = vadd.f32 (!%p1589_p3), %v518_v32, %v502_v28 }
 0x27f   : > { %v519_v33 = vld [vmem:[#allocation3 + $0x8] sm:$0xff] (!%p1589_p3) }
 0x280   : > { %v521_v35 = vadd.f32 (!%p1589_p3), %v519_v33, %v505_v30  ;;  %522 = vst [vmem:[#allocation3] sm:$0xff] (!%p1589_p3), %v520_v34 }
 0x282   : > { %523 = vst [vmem:[#allocation3 + $0x8] sm:$0xff] %v521_v35 }
 0x283 PF: > { %p524_p1 = scmp.eq.s32.totalorder %s1134_s21, 1  ;;  %p525_p6 = scmp.ne.s32.totalorder %s1138_s22, 3 }
 0x285   : > { %p526_p10 = pnand %p525_p6, %p524_p1 }
 0x286   : > { %v734_v38 = vld [vmem:[%s1454_s13] ss:$0 sm:$0xff] (!%p526_p10) }
 0x287   : > { %529 = sbr.rel (%p526_p10) target bundleno = 655 (0x28f), region = 68 }
 0x288   : > { %v530_v36 = vld [vmem:[#allocation3] sm:$0xff] (!%p526_p10) }
 0x289   : > { %v531_v37 = vld [vmem:[#allocation3 + $0x8] sm:$0xff] (!%p526_p10)  ;;  %v539_v39 = vadd.f32 (!%p526_p10), %v734_v38, %v530_v36 }
 0x28a   : > { %v540_v40 = vadd.f32 (!%p526_p10), %v734_v38, %v531_v37 }
 0x28c   : > { %v541_v41 = vpack.c.bf16 (!%p526_p10), %v540_v40, %v539_v39 }
 0x28e   : > { %542 = vst [vmem:[#allocation2] sm:$0xff] %v541_v41 }
 0x28f PF: > { %p543_p12 = scmp.eq.s32.totalorder %s1138_s22, 3 }
 0x291   : > { %p544_p13 = pnand %p543_p12, %p524_p1 }
 0x292   : > { %v548_v42 = vld [vmem:[#allocation3] sm:$0xff] (!%p544_p13)  ;;  %v735_v43 = vld [vmem:[%s1454_s13] ss:$0 sm:$0xff] (!%p544_p13)  ;;  %v549_v44 = vld [vmem:[#allocation3 + $0x8] sm:$0xff] (!%p544_p13)  ;;  %s740_s5 = sshll.u32 (!%p544_p13), %s1142_s23, 8  ;;  %s1590_s10 = sld [smem:[#allocation29_spill]] (!%p544_p13) }
 0x293   : > { %547 = sbr.rel (%p544_p13) target bundleno = 683 (0x2ab), region = 72  ;;  %v557_v45 = vadd.f32 (!%p544_p13), %v735_v43, %v548_v42  ;;  %v558_v46 = vadd.f32 (!%p544_p13), %v735_v43, %v549_v44  ;;  %s1169_s18 = smov (!%p544_p13), [#allocation3]  }
 0x294   : > { %s571_s6 = sshll.u32 (!%p544_p13), %s1169_s18, 4  ;;  %s572_s6 = int_to_ptr.vmem [resolvable:$true] %s571_s6 }
 0x295   : > { %559 = vst [vmem:[#allocation3] sm:$0xff] (!%p544_p13), %v557_v45  ;;  %560 = vst [vmem:[#allocation3 + $0x8] sm:$0xff] (!%p544_p13), %v558_v46  ;;  %s1042_s21 = scalar_lea.vmem (!%p544_p13), %s572_s6, 256  ;;  %p1047_p11 = scmp.lt.s32.totalorder (!%p544_p13), %s572_s6, %s572_s6 }
 0x296   : > { %p1043_p8 = scmp.ne.s32.totalorder (!%p544_p13), %s572_s6, %s1042_s21  ;;  %p1048_p0 = scmp.lt.s32.totalorder (!%p544_p13), %s1042_s21, %s1042_s21 }
 0x298   : > { %s563_s28 = scalar_lea.hbm (!%p544_p13), %s1590_s10, %s740_s5  ;;  %p1049_p9 = por (!%p544_p13), %p1048_p0, %p1047_p11 }
 0x29a   : > { %p1050_p5 = pnand %p1049_p9, %p1043_p8 }
 0x29c   : > { %1053 = shalt.err (!%p1050_p5)  }
 0x29d   : > { %s1054_s22 = scalar_lea.hbm %s563_s28, 256  ;;  %s1056_s29 = scalar_lea.hbm %s1590_s10, 512 }
 0x29e   : > { %p1055_p4 = scmp.ne.s32.totalorder %s563_s28, %s1054_s22  ;;  %p1057_p7 = scmp.lt.u32.totalorder %s563_s28, %s1590_s10 }
 0x29f   : > { %p1058_p2 = scmp.lt.u32.totalorder %s1056_s29, %s1054_s22  ;;  %p1060_p1 = scmp.lt.u32.totalorder %s1054_s22, %s563_s28 }
 0x2a1   : > { %p1059_p3 = por %p1058_p2, %p1057_p7 }
 0x2a3   : > { %p1061_p6 = por %p1060_p1, %p1059_p3 }
 0x2a5   : > { %p1062_p10 = pnand %p1061_p6, %p1055_p4 }
 0x2a7   : > { %1065 = shalt.err (!%p1062_p10)  }
 0x2a8   : > { %574 = dma.vmem_to_hbm [thread:$0]  %s572_s6, 256, %s563_s28, [#allocation5] }
 0x2a9   : > { %1118 = dma.done.wait [#allocation5], 256 }
 0x2aa   : > { %1119 = vsyncadd [#allocation5], 4294967040 }
 0x2ab PF: > { %s21_s27 = sadd.s32 1, %s1158_s27   ;;  %s1591_s30 = sld [smem:[#allocation21_spill]] }
 0x2ac   : > { %p18_p12 = scmp.ge.s32.totalorder %s21_s27, 17   ;;  %s1592_s20 = sld [smem:[#allocation26_spill]] }
 0x2ad   : > { %s1593_s23 = sld [smem:[#allocation22_spill]]  ;;  %s1594_s2 = sld [smem:[#allocation23_spill]] }
 0x2ae   : > { %s1595_s9 = sld [smem:[#allocation24_spill]]  ;;  %s1596_s26 = sld [smem:[#allocation25_spill]] }
 0x2af   : > { %s1597_s18 = smov %s1126_s19  ;;  %s1599_s21 = smov %s1146_s24 }
 0x2b0   : > { %s1600_s22 = smov %s1150_s25  ;;  %20 = sbr.rel (!%p18_p12) target bundleno = 12 (0xc), region = 117 }
 0x2b1   : > { %s1598_s19 = smov %s1591_s30 }
 0x2b3   : > { %s1601_s24 = smov %s1594_s2 }
 0x2b4   : > { %s1602_s25 = smov %s1595_s9 }
 0x2b7   :  { %578 = vsyncpa [#allocation7], 1 }
 0x2b8   :  { %580 = vsyncpa [#allocation7 + $0x1], 1 }
 0x2b9   :  { %581 = vsyncpa [#allocation9], 1 }
 0x2ba   :  { %583 = vsyncpa [#allocation9 + $0x1], 1 }
 0x2bb   :  { %584 = vsyncmov [#allocation4] }
 0x2be   :  { %s585_s1 = vpop.sfrf %584 }
 0x2bf   :  { %p738_p13 = scmp.ne.s32.totalorder %s585_s1, 0 }
 0x2c1   :  { %589 = shalt.err (%p738_p13)  }
 0x2c2   :  { %590 = vsyncmov [#allocation5] }
 0x2c5   :  { %s591_s14 = vpop.sfrf %590 }
 0x2c6   :  { %p739_p8 = scmp.ne.s32.totalorder %s591_s14, 0 }
 0x2c8   :  { %595 = shalt.err (%p739_p8)  }

</bundles_post_ra>
